<compile_context>
chip_gen: v7x
topology: tpu7x:2x2x1
jax: 0.10.0
libtpu: 0.0.40
codegen_flags: <defaults>
</compile_context>

<pallas_src>
import functools

import jax
import jax.numpy as jnp
from jax import lax
from jax.experimental import pallas as pl
from jax.experimental.pallas import tpu as pltpu

# --- Noise hyper-parameters (mirrors Noise.__init__) --------------------------------
GAU_PROB = 0.1          # prob. of adding gaussian noise to a continuous element
SUB_PROB = 0.1          # prob. of substituting a categorical element
SHUFFLE_DIST = 1        # kernel is specialised to max displacement 1
EMB_DIMS = [(10, 4), (7, 4), (5, 3), (12, 6)]   # (vocab_size, emb_size) per cat var
VOCAB_SIZES = tuple(d[0] for d in EMB_DIMS)     # only the vocab sizes are used

assert SHUFFLE_DIST == 1, "bounded pairwise-swap shuffle is only valid for dist == 1"

# Distinct stream salts so the five random fields never share bits.
_SALT_KEEP = 0x3C6EF372
_SALT_SUBV = 0xB5297A4D
_SALT_GMSK = 0x68E31DA4
_SALT_GVAL = 0x1B56C4E9
_SALT_SHUF = 0x2545F491

_SUB_THRESH = int(SUB_PROB * (1 << 24))
_GAU_THRESH = int(GAU_PROB * (1 << 24))


def _i32(v):
    """Python int -> int32 constant carrying the uint32 bit pattern (wraps)."""
    v &= 0xFFFFFFFF
    if v >= 1 << 31:
        v -= 1 << 32
    return jnp.int32(v)


def _srl(x, n):
    """Logical right shift on int32 (keeps everything in well-supported int32)."""
    return lax.shift_right_logical(x, jnp.int32(n))


def _inv_norm_cdf(p):
    """Acklam's inverse normal CDF approximation (|err| < 1.2e-9); log + sqrt only."""
    a1, a2, a3 = -3.969683028665376e+01, 2.209460984245205e+02, -2.759285104469687e+02
    a4, a5, a6 = 1.383577518672690e+02, -3.066479806614716e+01, 2.506628277459239e+00
    b1, b2, b3 = -5.447609879822406e+01, 1.615858368580409e+02, -1.556989798598866e+02
    b4, b5 = 6.680131188771972e+01, -1.328068155288572e+01
    c1, c2, c3 = -7.784894002430293e-03, -3.223964580411365e-01, -2.400758277161838e+00
    c4, c5, c6 = -2.549732539343734e+00, 4.374664141464968e+00, 2.938163982698783e+00
    d1, d2 = 7.784695709041462e-03, 3.224671290700398e-01
    d3, d4 = 2.445134137142996e+00, 3.754408661907416e+00
    p_low = 0.02425

    # Central region.
    q = p - 0.5
    r = q * q
    x_c = ((((((a1 * r + a2) * r + a3) * r + a4) * r + a5) * r + a6) * q /
           (((((b1 * r + b2) * r + b3) * r + b4) * r + b5) * r + 1.0))
    # Tails (formula gives the lower-tail value; negate for the upper tail).
    pt = jnp.minimum(p, 1.0 - p)
    qt = jnp.sqrt(-2.0 * jnp.log(pt))
    x_t = ((((((c1 * qt + c2) * qt + c3) * qt + c4) * qt + c5) * qt + c6) /
           ((((d1 * qt + d2) * qt + d3) * qt + d4) * qt + 1.0))
    x_t = jnp.where(p < 0.5, x_t, -x_t)
    return jnp.where((p > p_low) & (p < 1.0 - p_low), x_c, x_t)


def noise_kernel(seed_ref, vocab_ref, sidx_cat_ref, sidx_cont_ref,
                 cat_ref, cont_ref, cat_out_ref, cont_out_ref,
                 *, seq_len, c_cat, c_cont):
    bt, l_cat = cat_ref.shape
    _, l_cont = cont_ref.shape
    b = pl.program_id(0)
    seed = seed_ref[0]

    def rand_bits(ctr, salt):
        """Counter-based PRNG: two murmur3-style fmix32 rounds over (seed, salt, ctr)."""
        x = ctr * _i32(0x9E3779B1)
        x = x ^ (seed + _i32(salt))
        x = x ^ _srl(x, 16)
        x = x * _i32(0x85EBCA6B)
        x = x ^ _srl(x, 13)
        x = x * _i32(0xC2B2AE35)
        x = x ^ _srl(x, 16)
        x = x + _i32(salt * 0x9E3779B9)
        x = x ^ _srl(x, 16)
        x = x * _i32(0x85EBCA6B)
        x = x ^ _srl(x, 13)
        x = x * _i32(0xC2B2AE35)
        x = x ^ _srl(x, 16)
        return x

    def u24(bits):                       # int32 in [0, 2^24)
        return _srl(bits, 8)

    def uniform(bits):                   # float32 strictly inside (0, 1)
        return (u24(bits).astype(jnp.float32) + 0.5) * jnp.float32(1.0 / (1 << 24))

    def shift_next(x, c):                # value of seq position s+1 (junk at s=S-1, masked)
        return jnp.concatenate([x[:, c:], x[:, :c]], axis=1)

    def shift_prev(x, c):                # value of seq position s-1 (junk at s=0, masked)
        return jnp.concatenate([x[:, -c:], x[:, :-c]], axis=1)

    # Global row / element counters: unique across blocks so blocks & seeds decorrelate.
    row_c = lax.broadcasted_iota(jnp.int32, (bt, l_cat), 0) + b * bt
    lane_c = lax.broadcasted_iota(jnp.int32, (bt, l_cat), 1)
    eid_cat = row_c * l_cat + lane_c
    row_f = lax.broadcasted_iota(jnp.int32, (bt, l_cont), 0) + b * bt
    lane_f = lax.broadcasted_iota(jnp.int32, (bt, l_cont), 1)
    eid_cont = row_f * l_cont + lane_f

    # ---- _word_substitute: replace each categorical element w.p. SUB_PROB ----------
    cat = cat_ref[...]
    keep = u24(rand_bits(eid_cat, _SALT_KEEP)) >= jnp.int32(_SUB_THRESH)
    rand_cat = (uniform(rand_bits(eid_cat, _SALT_SUBV)) * vocab_ref[...]).astype(jnp.int32)
    cat_noisy = jnp.where(keep, cat, rand_cat)

    # ---- _word_gaussian: add N(0,1) noise to each continuous element w.p. GAU_PROB -
    cont = cont_ref[...]
    gmask = u24(rand_bits(eid_cont, _SALT_GMSK)) < jnp.int32(_GAU_THRESH)
    z = _inv_norm_cdf(uniform(rand_bits(eid_cont, _SALT_GVAL)))
    cont_noisy = cont + jnp.where(gmask, z, 0.0)

    # ---- _word_shuffle (dist == 1): the same bounded permutation for cat & cont ----
    # key[s] = s + 2*u[s]; its argsort only ever swaps disjoint adjacent pairs, and
    # pair (s, s+1) swaps iff inc[s] > inc[s+1] + 1.  inc is hashed from
    # (global row, seq index), so both tensors see identical swaps.
    def shuffled(x, sidx_ref, row, c):
        sidx = sidx_ref[...]                                   # (1, L) seq index of each lane
        pos = jnp.broadcast_to(sidx, x.shape)                  # full shape, cheap
        ctr = row * seq_len + sidx                             # depends on (row, s) only
        inc = (SHUFFLE_DIST + 1.0) * uniform(rand_bits(ctr, _SALT_SHUF))
        inc_next = shift_next(inc, c)
        inc_prev = shift_prev(inc, c)
        take_next = (inc > inc_next + 1.0) & (pos < seq_len - 1)   # out[s] = in[s+1]
        take_prev = (inc_prev > inc + 1.0) & (pos > 0)             # out[s] = in[s-1]
        return jnp.where(take_next, shift_next(x, c),
                         jnp.where(take_prev, shift_prev(x, c), x))

    cat_out_ref[...] = shuffled(cat_noisy, sidx_cat_ref, row_c, c_cat)
    cont_out_ref[...] = shuffled(cont_noisy, sidx_cont_ref, row_f, c_cont).astype(
        cont_out_ref.dtype)


def _pick_block_batch(B, l_cat, l_cont, vmem_budget_bytes=16 << 20):
    """Batch rows per grid step: a multiple of 8 that divides B and fits VMEM.

    Budget counts the input+output tiles (double-buffered) plus ~6 block-sized
    f32 temporaries that stay live inside the body; kept conservative so the
    same block size is safe on v5e (16 MiB scoped default), v6e and v7x (64 MiB
    physical VMEM).
    """
    bytes_per_row = 4 * (l_cat + l_cont) * (2 * 2 + 6)
    bt = max(1, vmem_budget_bytes // bytes_per_row)
    if bt >= B:
        return B
    bt = (bt // 8) * 8
    while bt >= 8 and B % bt:
        bt -= 8
    # Fallback: whole batch (block dim == full array dim is always legal).
    return int(bt) if bt >= 8 else B


@functools.partial(jax.jit, static_argnames=("block_batch",))
def noise_forward(seq_cat, seq_cont, seed, *, block_batch=None):
    """seq_cat: (B,S,C_cat) int32; seq_cont: (B,S,C_cont) float32; seed: (1,) int32."""
    B, S, c_cat = seq_cat.shape
    _, _, c_cont = seq_cont.shape
    assert c_cat == len(VOCAB_SIZES)
    l_cat, l_cont = S * c_cat, S * c_cont

    bt = _pick_block_batch(B, l_cat, l_cont) if block_batch is None else block_batch
    if B % bt:
        raise ValueError(f"block_batch={bt} must divide batch={B}")

    # Free row-major reshapes: the kernel sees the data in its natural HBM layout,
    # batch on sublanes and S*C on the lane (minor) axis.  No transposes anywhere.
    cat2d = seq_cat.astype(jnp.int32).reshape(B, l_cat)
    cont2d = seq_cont.astype(jnp.float32).reshape(B, l_cont)

    # Tiny per-lane helper rows: vocab size and sequence index of every lane.
    vocab_lane = jnp.tile(jnp.asarray(VOCAB_SIZES, jnp.float32), (S,)).reshape(1, l_cat)
    sidx_cat = jnp.repeat(jnp.arange(S, dtype=jnp.int32), c_cat).reshape(1, l_cat)
    sidx_cont = jnp.repeat(jnp.arange(S, dtype=jnp.int32), c_cont).reshape(1, l_cont)

    kernel = functools.partial(noise_kernel, seq_len=S, c_cat=c_cat, c_cont=c_cont)

    grid_spec = pltpu.PrefetchScalarGridSpec(
        num_scalar_prefetch=1,                       # seed lands in SMEM
        grid=(B // bt,),
        in_specs=[
            pl.BlockSpec((1, l_cat), lambda b, sref: (0, 0)),     # vocab per lane
            pl.BlockSpec((1, l_cat), lambda b, sref: (0, 0)),     # seq idx per lane (cat)
            pl.BlockSpec((1, l_cont), lambda b, sref: (0, 0)),    # seq idx per lane (cont)
            pl.BlockSpec((bt, l_cat), lambda b, sref: (b, 0)),
            pl.BlockSpec((bt, l_cont), lambda b, sref: (b, 0)),
        ],
        out_specs=[
            pl.BlockSpec((bt, l_cat), lambda b, sref: (b, 0)),
            pl.BlockSpec((bt, l_cont), lambda b, sref: (b, 0)),
        ],
    )
    n_el = B * (l_cat + l_cont)
    cost = pl.CostEstimate(flops=80 * n_el,
                           transcendentals=2 * B * l_cont,
                           bytes_accessed=8 * n_el)

    cat2d_out, cont2d_out = pl.pallas_call(
        kernel,
        grid_spec=grid_spec,
        out_shape=(jax.ShapeDtypeStruct((B, l_cat), jnp.int32),
                   jax.ShapeDtypeStruct((B, l_cont), jnp.float32)),
        compiler_params=pltpu.CompilerParams(
            dimension_semantics=("parallel",),        # batch blocks are independent
            vmem_limit_bytes=32 << 20),
        cost_estimate=cost,
    )(jnp.asarray(seed, jnp.int32).reshape(1), vocab_lane, sidx_cat, sidx_cont,
      cat2d, cont2d)

    return cat2d_out.reshape(B, S, c_cat), cont2d_out.reshape(B, S, c_cont)


if __name__ == "__main__":
    key = jax.random.PRNGKey(0)
    k_cat, k_cont = jax.random.split(key)

    B, S = 16, 16
    C_CAT = len(VOCAB_SIZES)     # 4 categorical variables
    C_CONT = 5                   # 5 continuous variables

    # Categorical data: each column i drawn from [0, vocab_sizes[i]).
    cols = [jax.random.randint(jax.random.fold_in(k_cat, i), (B, S, 1), 0, vs,
                               dtype=jnp.int32)
            for i, vs in enumerate(VOCAB_SIZES)]
    seq_cat = jnp.concatenate(cols, axis=-1)
    seq_cont = jax.random.normal(k_cont, (B, S, C_CONT), dtype=jnp.float32)

    seed = jnp.array([1234], dtype=jnp.int32)

    # block_batch=8 -> grid of 2 "parallel" steps, exercising per-block counters.
    cat_noisy, cont_noisy = noise_forward(seq_cat, seq_cont, seed, block_batch=8)
    jax.block_until_ready((cat_noisy, cont_noisy))

    # Shapes / dtypes preserved, categorical values stay inside their vocabs,
    # continuous output finite, and the kernel is deterministic for a fixed seed.
    assert cat_noisy.shape == seq_cat.shape and cat_noisy.dtype == jnp.int32
    assert cont_noisy.shape == seq_cont.shape and cont_noisy.dtype == jnp.float32
    vocab_arr = jnp.array(VOCAB_SIZES, jnp.int32)[None, None, :]
    assert bool(jnp.all((cat_noisy >= 0) & (cat_noisy < vocab_arr)))
    assert bool(jnp.all(jnp.isfinite(cont_noisy)))

    cat2, cont2 = noise_forward(seq_cat, seq_cont, seed, block_batch=8)
    jax.block_until_ready((cat2, cont2))
    assert bool(jnp.all(cat2 == cat_noisy)) and bool(jnp.all(cont2 == cont_noisy))

    print("KERNEL_OK")
</pallas_src>

<mosaic_0001>
module attributes {stable_mosaic.version = 11 : i64} {
  func.func @noise_kernel(%arg0: i32, %arg1: memref<1xi32, #tpu.memory_space<smem>>, %arg2: memref<1x64xf32, #tpu.memory_space<vmem>>, %arg3: memref<1x64xi32, #tpu.memory_space<vmem>>, %arg4: memref<1x80xi32, #tpu.memory_space<vmem>>, %arg5: memref<8x64xi32, #tpu.memory_space<vmem>>, %arg6: memref<8x80xf32, #tpu.memory_space<vmem>>, %arg7: memref<8x64xi32, #tpu.memory_space<vmem>>, %arg8: memref<8x80xf32, #tpu.memory_space<vmem>>) attributes {dimension_semantics = [#tpu.dimension_semantics<parallel>], iteration_bounds = array<i64: 2>, scalar_prefetch = 1 : i64, scratch_operands = 0 : i64, tpu.core_type = #tpu.core_type<tc>, window_params = [{pipeline_mode = #tpu.pipeline_mode<synchronous>, transform_indices = @transform_0, window_bounds = array<i64: 1, 64>}, {pipeline_mode = #tpu.pipeline_mode<synchronous>, transform_indices = @transform_1, window_bounds = array<i64: 1, 64>}, {pipeline_mode = #tpu.pipeline_mode<synchronous>, transform_indices = @transform_2, window_bounds = array<i64: 1, 80>}, {transform_indices = @transform_3, window_bounds = array<i64: 8, 64>}, {transform_indices = @transform_4, window_bounds = array<i64: 8, 80>}, {transform_indices = @transform_5, window_bounds = array<i64: 8, 64>}, {transform_indices = @transform_6, window_bounds = array<i64: 8, 80>}]} {
    %c0 = arith.constant 0 : index
    %0 = memref.load %arg1[%c0] : memref<1xi32, #tpu.memory_space<smem>>
    %1 = tpu.iota {dimensions = array<i32: 0>} : vector<8x64xi32>
    %c8_i32 = arith.constant 8 : i32
    %2 = arith.muli %arg0, %c8_i32 : i32
    %3 = vector.broadcast %2 : i32 to vector<8x64xi32>
    %4 = arith.addi %1, %3 : vector<8x64xi32>
    %5 = tpu.iota {dimensions = array<i32: 1>} : vector<8x64xi32>
    %c64_i32 = arith.constant 64 : i32
    %6 = vector.broadcast %c64_i32 : i32 to vector<8x64xi32>
    %7 = arith.muli %4, %6 : vector<8x64xi32>
    %8 = arith.addi %7, %5 : vector<8x64xi32>
    %9 = tpu.iota {dimensions = array<i32: 0>} : vector<8x80xi32>
    %c8_i32_0 = arith.constant 8 : i32
    %10 = arith.muli %arg0, %c8_i32_0 : i32
    %11 = vector.broadcast %10 : i32 to vector<8x80xi32>
    %12 = arith.addi %9, %11 : vector<8x80xi32>
    %13 = tpu.iota {dimensions = array<i32: 1>} : vector<8x80xi32>
    %c80_i32 = arith.constant 80 : i32
    %14 = vector.broadcast %c80_i32 : i32 to vector<8x80xi32>
    %15 = arith.muli %12, %14 : vector<8x80xi32>
    %16 = arith.addi %15, %13 : vector<8x80xi32>
    %c0_1 = arith.constant 0 : index
    %c0_2 = arith.constant 0 : index
    %17 = vector.load %arg5[%c0_1, %c0_2] : memref<8x64xi32, #tpu.memory_space<vmem>>, vector<8x64xi32>
    %c-1640531535_i32 = arith.constant -1640531535 : i32
    %18 = vector.broadcast %c-1640531535_i32 : i32 to vector<8x64xi32>
    %19 = arith.muli %8, %18 : vector<8x64xi32>
    %c1013904242_i32 = arith.constant 1013904242 : i32
    %20 = arith.addi %0, %c1013904242_i32 : i32
    %21 = vector.broadcast %20 : i32 to vector<8x64xi32>
    %22 = arith.xori %19, %21 : vector<8x64xi32>
    %c16_i32 = arith.constant 16 : i32
    %23 = vector.broadcast %c16_i32 : i32 to vector<8x64xi32>
    %24 = arith.shrui %22, %23 : vector<8x64xi32>
    %25 = arith.xori %22, %24 : vector<8x64xi32>
    %c-2048144789_i32 = arith.constant -2048144789 : i32
    %26 = vector.broadcast %c-2048144789_i32 : i32 to vector<8x64xi32>
    %27 = arith.muli %25, %26 : vector<8x64xi32>
    %c13_i32 = arith.constant 13 : i32
    %28 = vector.broadcast %c13_i32 : i32 to vector<8x64xi32>
    %29 = arith.shrui %27, %28 : vector<8x64xi32>
    %30 = arith.xori %27, %29 : vector<8x64xi32>
    %c-1028477387_i32 = arith.constant -1028477387 : i32
    %31 = vector.broadcast %c-1028477387_i32 : i32 to vector<8x64xi32>
    %32 = arith.muli %30, %31 : vector<8x64xi32>
    %c16_i32_3 = arith.constant 16 : i32
    %33 = vector.broadcast %c16_i32_3 : i32 to vector<8x64xi32>
    %34 = arith.shrui %32, %33 : vector<8x64xi32>
    %35 = arith.xori %32, %34 : vector<8x64xi32>
    %c-960704670_i32 = arith.constant -960704670 : i32
    %36 = vector.broadcast %c-960704670_i32 : i32 to vector<8x64xi32>
    %37 = arith.addi %35, %36 : vector<8x64xi32>
    %c16_i32_4 = arith.constant 16 : i32
    %38 = vector.broadcast %c16_i32_4 : i32 to vector<8x64xi32>
    %39 = arith.shrui %37, %38 : vector<8x64xi32>
    %40 = arith.xori %37, %39 : vector<8x64xi32>
    %c-2048144789_i32_5 = arith.constant -2048144789 : i32
    %41 = vector.broadcast %c-2048144789_i32_5 : i32 to vector<8x64xi32>
    %42 = arith.muli %40, %41 : vector<8x64xi32>
    %c13_i32_6 = arith.constant 13 : i32
    %43 = vector.broadcast %c13_i32_6 : i32 to vector<8x64xi32>
    %44 = arith.shrui %42, %43 : vector<8x64xi32>
    %45 = arith.xori %42, %44 : vector<8x64xi32>
    %c-1028477387_i32_7 = arith.constant -1028477387 : i32
    %46 = vector.broadcast %c-1028477387_i32_7 : i32 to vector<8x64xi32>
    %47 = arith.muli %45, %46 : vector<8x64xi32>
    %c16_i32_8 = arith.constant 16 : i32
    %48 = vector.broadcast %c16_i32_8 : i32 to vector<8x64xi32>
    %49 = arith.shrui %47, %48 : vector<8x64xi32>
    %50 = arith.xori %47, %49 : vector<8x64xi32>
    %c8_i32_9 = arith.constant 8 : i32
    %51 = vector.broadcast %c8_i32_9 : i32 to vector<8x64xi32>
    %52 = arith.shrui %50, %51 : vector<8x64xi32>
    %c1677721_i32 = arith.constant 1677721 : i32
    %53 = vector.broadcast %c1677721_i32 : i32 to vector<8x64xi32>
    %54 = arith.cmpi sge, %52, %53 : vector<8x64xi32>
    %c-1640531535_i32_10 = arith.constant -1640531535 : i32
    %55 = vector.broadcast %c-1640531535_i32_10 : i32 to vector<8x64xi32>
    %56 = arith.muli %8, %55 : vector<8x64xi32>
    %c-1255572915_i32 = arith.constant -1255572915 : i32
    %57 = arith.addi %0, %c-1255572915_i32 : i32
    %58 = vector.broadcast %57 : i32 to vector<8x64xi32>
    %59 = arith.xori %56, %58 : vector<8x64xi32>
    %c16_i32_11 = arith.constant 16 : i32
    %60 = vector.broadcast %c16_i32_11 : i32 to vector<8x64xi32>
    %61 = arith.shrui %59, %60 : vector<8x64xi32>
    %62 = arith.xori %59, %61 : vector<8x64xi32>
    %c-2048144789_i32_12 = arith.constant -2048144789 : i32
    %63 = vector.broadcast %c-2048144789_i32_12 : i32 to vector<8x64xi32>
    %64 = arith.muli %62, %63 : vector<8x64xi32>
    %c13_i32_13 = arith.constant 13 : i32
    %65 = vector.broadcast %c13_i32_13 : i32 to vector<8x64xi32>
    %66 = arith.shrui %64, %65 : vector<8x64xi32>
    %67 = arith.xori %64, %66 : vector<8x64xi32>
    %c-1028477387_i32_14 = arith.constant -1028477387 : i32
    %68 = vector.broadcast %c-1028477387_i32_14 : i32 to vector<8x64xi32>
    %69 = arith.muli %67, %68 : vector<8x64xi32>
    %c16_i32_15 = arith.constant 16 : i32
    %70 = vector.broadcast %c16_i32_15 : i32 to vector<8x64xi32>
    %71 = arith.shrui %69, %70 : vector<8x64xi32>
    %72 = arith.xori %69, %71 : vector<8x64xi32>
    %c1381156517_i32 = arith.constant 1381156517 : i32
    %73 = vector.broadcast %c1381156517_i32 : i32 to vector<8x64xi32>
    %74 = arith.addi %72, %73 : vector<8x64xi32>
    %c16_i32_16 = arith.constant 16 : i32
    %75 = vector.broadcast %c16_i32_16 : i32 to vector<8x64xi32>
    %76 = arith.shrui %74, %75 : vector<8x64xi32>
    %77 = arith.xori %74, %76 : vector<8x64xi32>
    %c-2048144789_i32_17 = arith.constant -2048144789 : i32
    %78 = vector.broadcast %c-2048144789_i32_17 : i32 to vector<8x64xi32>
    %79 = arith.muli %77, %78 : vector<8x64xi32>
    %c13_i32_18 = arith.constant 13 : i32
    %80 = vector.broadcast %c13_i32_18 : i32 to vector<8x64xi32>
    %81 = arith.shrui %79, %80 : vector<8x64xi32>
    %82 = arith.xori %79, %81 : vector<8x64xi32>
    %c-1028477387_i32_19 = arith.constant -1028477387 : i32
    %83 = vector.broadcast %c-1028477387_i32_19 : i32 to vector<8x64xi32>
    %84 = arith.muli %82, %83 : vector<8x64xi32>
    %c16_i32_20 = arith.constant 16 : i32
    %85 = vector.broadcast %c16_i32_20 : i32 to vector<8x64xi32>
    %86 = arith.shrui %84, %85 : vector<8x64xi32>
    %87 = arith.xori %84, %86 : vector<8x64xi32>
    %c8_i32_21 = arith.constant 8 : i32
    %88 = vector.broadcast %c8_i32_21 : i32 to vector<8x64xi32>
    %89 = arith.shrui %87, %88 : vector<8x64xi32>
    %90 = arith.sitofp %89 : vector<8x64xi32> to vector<8x64xf32>
    %cst = arith.constant 5.000000e-01 : f32
    %91 = vector.broadcast %cst : f32 to vector<8x64xf32>
    %92 = arith.addf %90, %91 : vector<8x64xf32>
    %cst_22 = arith.constant 5.96046448E-8 : f32
    %93 = vector.broadcast %cst_22 : f32 to vector<8x64xf32>
    %94 = arith.mulf %92, %93 : vector<8x64xf32>
    %c0_23 = arith.constant 0 : index
    %c0_24 = arith.constant 0 : index
    %95 = vector.load %arg2[%c0_23, %c0_24] : memref<1x64xf32, #tpu.memory_space<vmem>>, vector<1x64xf32>
    %96 = vector.broadcast %95 : vector<1x64xf32> to vector<8x64xf32>
    %97 = arith.mulf %94, %96 : vector<8x64xf32>
    %98 = arith.fptosi %97 : vector<8x64xf32> to vector<8x64xi32>
    %99 = arith.select %54, %17, %98 : vector<8x64xi1>, vector<8x64xi32>
    %c0_25 = arith.constant 0 : index
    %c0_26 = arith.constant 0 : index
    %100 = vector.load %arg6[%c0_25, %c0_26] : memref<8x80xf32, #tpu.memory_space<vmem>>, vector<8x80xf32>
    %c-1640531535_i32_27 = arith.constant -1640531535 : i32
    %101 = vector.broadcast %c-1640531535_i32_27 : i32 to vector<8x80xi32>
    %102 = arith.muli %16, %101 : vector<8x80xi32>
    %c1759714724_i32 = arith.constant 1759714724 : i32
    %103 = arith.addi %0, %c1759714724_i32 : i32
    %104 = vector.broadcast %103 : i32 to vector<8x80xi32>
    %105 = arith.xori %102, %104 : vector<8x80xi32>
    %c16_i32_28 = arith.constant 16 : i32
    %106 = vector.broadcast %c16_i32_28 : i32 to vector<8x80xi32>
    %107 = arith.shrui %105, %106 : vector<8x80xi32>
    %108 = arith.xori %105, %107 : vector<8x80xi32>
    %c-2048144789_i32_29 = arith.constant -2048144789 : i32
    %109 = vector.broadcast %c-2048144789_i32_29 : i32 to vector<8x80xi32>
    %110 = arith.muli %108, %109 : vector<8x80xi32>
    %c13_i32_30 = arith.constant 13 : i32
    %111 = vector.broadcast %c13_i32_30 : i32 to vector<8x80xi32>
    %112 = arith.shrui %110, %111 : vector<8x80xi32>
    %113 = arith.xori %110, %112 : vector<8x80xi32>
    %c-1028477387_i32_31 = arith.constant -1028477387 : i32
    %114 = vector.broadcast %c-1028477387_i32_31 : i32 to vector<8x80xi32>
    %115 = arith.muli %113, %114 : vector<8x80xi32>
    %c16_i32_32 = arith.constant 16 : i32
    %116 = vector.broadcast %c16_i32_32 : i32 to vector<8x80xi32>
    %117 = arith.shrui %115, %116 : vector<8x80xi32>
    %118 = arith.xori %115, %117 : vector<8x80xi32>
    %c-1151406204_i32 = arith.constant -1151406204 : i32
    %119 = vector.broadcast %c-1151406204_i32 : i32 to vector<8x80xi32>
    %120 = arith.addi %118, %119 : vector<8x80xi32>
    %c16_i32_33 = arith.constant 16 : i32
    %121 = vector.broadcast %c16_i32_33 : i32 to vector<8x80xi32>
    %122 = arith.shrui %120, %121 : vector<8x80xi32>
    %123 = arith.xori %120, %122 : vector<8x80xi32>
    %c-2048144789_i32_34 = arith.constant -2048144789 : i32
    %124 = vector.broadcast %c-2048144789_i32_34 : i32 to vector<8x80xi32>
    %125 = arith.muli %123, %124 : vector<8x80xi32>
    %c13_i32_35 = arith.constant 13 : i32
    %126 = vector.broadcast %c13_i32_35 : i32 to vector<8x80xi32>
    %127 = arith.shrui %125, %126 : vector<8x80xi32>
    %128 = arith.xori %125, %127 : vector<8x80xi32>
    %c-1028477387_i32_36 = arith.constant -1028477387 : i32
    %129 = vector.broadcast %c-1028477387_i32_36 : i32 to vector<8x80xi32>
    %130 = arith.muli %128, %129 : vector<8x80xi32>
    %c16_i32_37 = arith.constant 16 : i32
    %131 = vector.broadcast %c16_i32_37 : i32 to vector<8x80xi32>
    %132 = arith.shrui %130, %131 : vector<8x80xi32>
    %133 = arith.xori %130, %132 : vector<8x80xi32>
    %c8_i32_38 = arith.constant 8 : i32
    %134 = vector.broadcast %c8_i32_38 : i32 to vector<8x80xi32>
    %135 = arith.shrui %133, %134 : vector<8x80xi32>
    %c1677721_i32_39 = arith.constant 1677721 : i32
    %136 = vector.broadcast %c1677721_i32_39 : i32 to vector<8x80xi32>
    %137 = arith.cmpi slt, %135, %136 : vector<8x80xi32>
    %c-1640531535_i32_40 = arith.constant -1640531535 : i32
    %138 = vector.broadcast %c-1640531535_i32_40 : i32 to vector<8x80xi32>
    %139 = arith.muli %16, %138 : vector<8x80xi32>
    %c458671337_i32 = arith.constant 458671337 : i32
    %140 = arith.addi %0, %c458671337_i32 : i32
    %141 = vector.broadcast %140 : i32 to vector<8x80xi32>
    %142 = arith.xori %139, %141 : vector<8x80xi32>
    %c16_i32_41 = arith.constant 16 : i32
    %143 = vector.broadcast %c16_i32_41 : i32 to vector<8x80xi32>
    %144 = arith.shrui %142, %143 : vector<8x80xi32>
    %145 = arith.xori %142, %144 : vector<8x80xi32>
    %c-2048144789_i32_42 = arith.constant -2048144789 : i32
    %146 = vector.broadcast %c-2048144789_i32_42 : i32 to vector<8x80xi32>
    %147 = arith.muli %145, %146 : vector<8x80xi32>
    %c13_i32_43 = arith.constant 13 : i32
    %148 = vector.broadcast %c13_i32_43 : i32 to vector<8x80xi32>
    %149 = arith.shrui %147, %148 : vector<8x80xi32>
    %150 = arith.xori %147, %149 : vector<8x80xi32>
    %c-1028477387_i32_44 = arith.constant -1028477387 : i32
    %151 = vector.broadcast %c-1028477387_i32_44 : i32 to vector<8x80xi32>
    %152 = arith.muli %150, %151 : vector<8x80xi32>
    %c16_i32_45 = arith.constant 16 : i32
    %153 = vector.broadcast %c16_i32_45 : i32 to vector<8x80xi32>
    %154 = arith.shrui %152, %153 : vector<8x80xi32>
    %155 = arith.xori %152, %154 : vector<8x80xi32>
    %c-522883743_i32 = arith.constant -522883743 : i32
    %156 = vector.broadcast %c-522883743_i32 : i32 to vector<8x80xi32>
    %157 = arith.addi %155, %156 : vector<8x80xi32>
    %c16_i32_46 = arith.constant 16 : i32
    %158 = vector.broadcast %c16_i32_46 : i32 to vector<8x80xi32>
    %159 = arith.shrui %157, %158 : vector<8x80xi32>
    %160 = arith.xori %157, %159 : vector<8x80xi32>
    %c-2048144789_i32_47 = arith.constant -2048144789 : i32
    %161 = vector.broadcast %c-2048144789_i32_47 : i32 to vector<8x80xi32>
    %162 = arith.muli %160, %161 : vector<8x80xi32>
    %c13_i32_48 = arith.constant 13 : i32
    %163 = vector.broadcast %c13_i32_48 : i32 to vector<8x80xi32>
    %164 = arith.shrui %162, %163 : vector<8x80xi32>
    %165 = arith.xori %162, %164 : vector<8x80xi32>
    %c-1028477387_i32_49 = arith.constant -1028477387 : i32
    %166 = vector.broadcast %c-1028477387_i32_49 : i32 to vector<8x80xi32>
    %167 = arith.muli %165, %166 : vector<8x80xi32>
    %c16_i32_50 = arith.constant 16 : i32
    %168 = vector.broadcast %c16_i32_50 : i32 to vector<8x80xi32>
    %169 = arith.shrui %167, %168 : vector<8x80xi32>
    %170 = arith.xori %167, %169 : vector<8x80xi32>
    %c8_i32_51 = arith.constant 8 : i32
    %171 = vector.broadcast %c8_i32_51 : i32 to vector<8x80xi32>
    %172 = arith.shrui %170, %171 : vector<8x80xi32>
    %173 = arith.sitofp %172 : vector<8x80xi32> to vector<8x80xf32>
    %cst_52 = arith.constant 5.000000e-01 : f32
    %174 = vector.broadcast %cst_52 : f32 to vector<8x80xf32>
    %175 = arith.addf %173, %174 : vector<8x80xf32>
    %cst_53 = arith.constant 5.96046448E-8 : f32
    %176 = vector.broadcast %cst_53 : f32 to vector<8x80xf32>
    %177 = arith.mulf %175, %176 : vector<8x80xf32>
    %cst_54 = arith.constant 5.000000e-01 : f32
    %178 = vector.broadcast %cst_54 : f32 to vector<8x80xf32>
    %179 = arith.subf %177, %178 : vector<8x80xf32>
    %180 = arith.mulf %179, %179 : vector<8x80xf32>
    %cst_55 = arith.constant -39.6968307 : f32
    %181 = vector.broadcast %cst_55 : f32 to vector<8x80xf32>
    %182 = arith.mulf %181, %180 : vector<8x80xf32>
    %cst_56 = arith.constant 220.946106 : f32
    %183 = vector.broadcast %cst_56 : f32 to vector<8x80xf32>
    %184 = arith.addf %182, %183 : vector<8x80xf32>
    %185 = arith.mulf %184, %180 : vector<8x80xf32>
    %cst_57 = arith.constant -275.928497 : f32
    %186 = vector.broadcast %cst_57 : f32 to vector<8x80xf32>
    %187 = arith.addf %185, %186 : vector<8x80xf32>
    %188 = arith.mulf %187, %180 : vector<8x80xf32>
    %cst_58 = arith.constant 138.357758 : f32
    %189 = vector.broadcast %cst_58 : f32 to vector<8x80xf32>
    %190 = arith.addf %188, %189 : vector<8x80xf32>
    %191 = arith.mulf %190, %180 : vector<8x80xf32>
    %cst_59 = arith.constant -30.6647987 : f32
    %192 = vector.broadcast %cst_59 : f32 to vector<8x80xf32>
    %193 = arith.addf %191, %192 : vector<8x80xf32>
    %194 = arith.mulf %193, %180 : vector<8x80xf32>
    %cst_60 = arith.constant 2.50662827 : f32
    %195 = vector.broadcast %cst_60 : f32 to vector<8x80xf32>
    %196 = arith.addf %194, %195 : vector<8x80xf32>
    %197 = arith.mulf %196, %179 : vector<8x80xf32>
    %cst_61 = arith.constant -54.4760971 : f32
    %198 = vector.broadcast %cst_61 : f32 to vector<8x80xf32>
    %199 = arith.mulf %198, %180 : vector<8x80xf32>
    %cst_62 = arith.constant 161.585831 : f32
    %200 = vector.broadcast %cst_62 : f32 to vector<8x80xf32>
    %201 = arith.addf %199, %200 : vector<8x80xf32>
    %202 = arith.mulf %201, %180 : vector<8x80xf32>
    %cst_63 = arith.constant -155.698975 : f32
    %203 = vector.broadcast %cst_63 : f32 to vector<8x80xf32>
    %204 = arith.addf %202, %203 : vector<8x80xf32>
    %205 = arith.mulf %204, %180 : vector<8x80xf32>
    %cst_64 = arith.constant 66.8013153 : f32
    %206 = vector.broadcast %cst_64 : f32 to vector<8x80xf32>
    %207 = arith.addf %205, %206 : vector<8x80xf32>
    %208 = arith.mulf %207, %180 : vector<8x80xf32>
    %cst_65 = arith.constant -13.2806816 : f32
    %209 = vector.broadcast %cst_65 : f32 to vector<8x80xf32>
    %210 = arith.addf %208, %209 : vector<8x80xf32>
    %211 = arith.mulf %210, %180 : vector<8x80xf32>
    %cst_66 = arith.constant 1.000000e+00 : f32
    %212 = vector.broadcast %cst_66 : f32 to vector<8x80xf32>
    %213 = arith.addf %211, %212 : vector<8x80xf32>
    %214 = arith.divf %197, %213 : vector<8x80xf32>
    %cst_67 = arith.constant 1.000000e+00 : f32
    %215 = vector.broadcast %cst_67 : f32 to vector<8x80xf32>
    %216 = arith.subf %215, %177 : vector<8x80xf32>
    %217 = arith.minimumf %177, %216 : vector<8x80xf32>
    %218 = math.log %217 : vector<8x80xf32>
    %cst_68 = arith.constant -2.000000e+00 : f32
    %219 = vector.broadcast %cst_68 : f32 to vector<8x80xf32>
    %220 = arith.mulf %219, %218 : vector<8x80xf32>
    %221 = math.sqrt %220 : vector<8x80xf32>
    %cst_69 = arith.constant -0.0077848942 : f32
    %222 = vector.broadcast %cst_69 : f32 to vector<8x80xf32>
    %223 = arith.mulf %222, %221 : vector<8x80xf32>
    %cst_70 = arith.constant -0.322396457 : f32
    %224 = vector.broadcast %cst_70 : f32 to vector<8x80xf32>
    %225 = arith.addf %223, %224 : vector<8x80xf32>
    %226 = arith.mulf %225, %221 : vector<8x80xf32>
    %cst_71 = arith.constant -2.40075827 : f32
    %227 = vector.broadcast %cst_71 : f32 to vector<8x80xf32>
    %228 = arith.addf %226, %227 : vector<8x80xf32>
    %229 = arith.mulf %228, %221 : vector<8x80xf32>
    %cst_72 = arith.constant -2.54973245 : f32
    %230 = vector.broadcast %cst_72 : f32 to vector<8x80xf32>
    %231 = arith.addf %229, %230 : vector<8x80xf32>
    %232 = arith.mulf %231, %221 : vector<8x80xf32>
    %cst_73 = arith.constant 4.37466431 : f32
    %233 = vector.broadcast %cst_73 : f32 to vector<8x80xf32>
    %234 = arith.addf %232, %233 : vector<8x80xf32>
    %235 = arith.mulf %234, %221 : vector<8x80xf32>
    %cst_74 = arith.constant 2.938164 : f32
    %236 = vector.broadcast %cst_74 : f32 to vector<8x80xf32>
    %237 = arith.addf %235, %236 : vector<8x80xf32>
    %cst_75 = arith.constant 0.00778469583 : f32
    %238 = vector.broadcast %cst_75 : f32 to vector<8x80xf32>
    %239 = arith.mulf %238, %221 : vector<8x80xf32>
    %cst_76 = arith.constant 0.322467119 : f32
    %240 = vector.broadcast %cst_76 : f32 to vector<8x80xf32>
    %241 = arith.addf %239, %240 : vector<8x80xf32>
    %242 = arith.mulf %241, %221 : vector<8x80xf32>
    %cst_77 = arith.constant 2.44513416 : f32
    %243 = vector.broadcast %cst_77 : f32 to vector<8x80xf32>
    %244 = arith.addf %242, %243 : vector<8x80xf32>
    %245 = arith.mulf %244, %221 : vector<8x80xf32>
    %cst_78 = arith.constant 3.7544086 : f32
    %246 = vector.broadcast %cst_78 : f32 to vector<8x80xf32>
    %247 = arith.addf %245, %246 : vector<8x80xf32>
    %248 = arith.mulf %247, %221 : vector<8x80xf32>
    %cst_79 = arith.constant 1.000000e+00 : f32
    %249 = vector.broadcast %cst_79 : f32 to vector<8x80xf32>
    %250 = arith.addf %248, %249 : vector<8x80xf32>
    %251 = arith.divf %237, %250 : vector<8x80xf32>
    %cst_80 = arith.constant 5.000000e-01 : f32
    %252 = vector.broadcast %cst_80 : f32 to vector<8x80xf32>
    %253 = arith.cmpf olt, %177, %252 : vector<8x80xf32>
    %cst_81 = arith.constant 0.000000e+00 : f32
    %254 = vector.broadcast %cst_81 : f32 to vector<8x80xf32>
    %255 = arith.subf %254, %251 : vector<8x80xf32>
    %256 = arith.select %253, %251, %255 : vector<8x80xi1>, vector<8x80xf32>
    %cst_82 = arith.constant 2.425000e-02 : f32
    %257 = vector.broadcast %cst_82 : f32 to vector<8x80xf32>
    %258 = arith.cmpf ogt, %177, %257 : vector<8x80xf32>
    %cst_83 = arith.constant 9.757500e-01 : f32
    %259 = vector.broadcast %cst_83 : f32 to vector<8x80xf32>
    %260 = arith.cmpf olt, %177, %259 : vector<8x80xf32>
    %261 = arith.andi %258, %260 : vector<8x80xi1>
    %262 = arith.select %261, %214, %256 : vector<8x80xi1>, vector<8x80xf32>
    %cst_84 = arith.constant 0.000000e+00 : f32
    %263 = vector.broadcast %cst_84 : f32 to vector<8x80xf32>
    %264 = arith.select %137, %262, %263 : vector<8x80xi1>, vector<8x80xf32>
    %265 = arith.addf %100, %264 : vector<8x80xf32>
    %c0_85 = arith.constant 0 : index
    %c0_86 = arith.constant 0 : index
    %266 = vector.load %arg3[%c0_85, %c0_86] : memref<1x64xi32, #tpu.memory_space<vmem>>, vector<1x64xi32>
    %267 = vector.shape_cast %266 : vector<1x64xi32> to vector<1x64xi32>
    %268 = vector.broadcast %267 : vector<1x64xi32> to vector<8x64xi32>
    %c16_i32_87 = arith.constant 16 : i32
    %269 = vector.broadcast %c16_i32_87 : i32 to vector<8x64xi32>
    %270 = arith.muli %4, %269 : vector<8x64xi32>
    %271 = vector.broadcast %266 : vector<1x64xi32> to vector<8x64xi32>
    %272 = arith.addi %270, %271 : vector<8x64xi32>
    %c-1640531535_i32_88 = arith.constant -1640531535 : i32
    %273 = vector.broadcast %c-1640531535_i32_88 : i32 to vector<8x64xi32>
    %274 = arith.muli %272, %273 : vector<8x64xi32>
    %c625341585_i32 = arith.constant 625341585 : i32
    %275 = arith.addi %0, %c625341585_i32 : i32
    %276 = vector.broadcast %275 : i32 to vector<8x64xi32>
    %277 = arith.xori %274, %276 : vector<8x64xi32>
    %c16_i32_89 = arith.constant 16 : i32
    %278 = vector.broadcast %c16_i32_89 : i32 to vector<8x64xi32>
    %279 = arith.shrui %277, %278 : vector<8x64xi32>
    %280 = arith.xori %277, %279 : vector<8x64xi32>
    %c-2048144789_i32_90 = arith.constant -2048144789 : i32
    %281 = vector.broadcast %c-2048144789_i32_90 : i32 to vector<8x64xi32>
    %282 = arith.muli %280, %281 : vector<8x64xi32>
    %c13_i32_91 = arith.constant 13 : i32
    %283 = vector.broadcast %c13_i32_91 : i32 to vector<8x64xi32>
    %284 = arith.shrui %282, %283 : vector<8x64xi32>
    %285 = arith.xori %282, %284 : vector<8x64xi32>
    %c-1028477387_i32_92 = arith.constant -1028477387 : i32
    %286 = vector.broadcast %c-1028477387_i32_92 : i32 to vector<8x64xi32>
    %287 = arith.muli %285, %286 : vector<8x64xi32>
    %c16_i32_93 = arith.constant 16 : i32
    %288 = vector.broadcast %c16_i32_93 : i32 to vector<8x64xi32>
    %289 = arith.shrui %287, %288 : vector<8x64xi32>
    %290 = arith.xori %287, %289 : vector<8x64xi32>
    %c156059081_i32 = arith.constant 156059081 : i32
    %291 = vector.broadcast %c156059081_i32 : i32 to vector<8x64xi32>
    %292 = arith.addi %290, %291 : vector<8x64xi32>
    %c16_i32_94 = arith.constant 16 : i32
    %293 = vector.broadcast %c16_i32_94 : i32 to vector<8x64xi32>
    %294 = arith.shrui %292, %293 : vector<8x64xi32>
    %295 = arith.xori %292, %294 : vector<8x64xi32>
    %c-2048144789_i32_95 = arith.constant -2048144789 : i32
    %296 = vector.broadcast %c-2048144789_i32_95 : i32 to vector<8x64xi32>
    %297 = arith.muli %295, %296 : vector<8x64xi32>
    %c13_i32_96 = arith.constant 13 : i32
    %298 = vector.broadcast %c13_i32_96 : i32 to vector<8x64xi32>
    %299 = arith.shrui %297, %298 : vector<8x64xi32>
    %300 = arith.xori %297, %299 : vector<8x64xi32>
    %c-1028477387_i32_97 = arith.constant -1028477387 : i32
    %301 = vector.broadcast %c-1028477387_i32_97 : i32 to vector<8x64xi32>
    %302 = arith.muli %300, %301 : vector<8x64xi32>
    %c16_i32_98 = arith.constant 16 : i32
    %303 = vector.broadcast %c16_i32_98 : i32 to vector<8x64xi32>
    %304 = arith.shrui %302, %303 : vector<8x64xi32>
    %305 = arith.xori %302, %304 : vector<8x64xi32>
    %c8_i32_99 = arith.constant 8 : i32
    %306 = vector.broadcast %c8_i32_99 : i32 to vector<8x64xi32>
    %307 = arith.shrui %305, %306 : vector<8x64xi32>
    %308 = arith.sitofp %307 : vector<8x64xi32> to vector<8x64xf32>
    %cst_100 = arith.constant 5.000000e-01 : f32
    %309 = vector.broadcast %cst_100 : f32 to vector<8x64xf32>
    %310 = arith.addf %308, %309 : vector<8x64xf32>
    %cst_101 = arith.constant 5.96046448E-8 : f32
    %311 = vector.broadcast %cst_101 : f32 to vector<8x64xf32>
    %312 = arith.mulf %310, %311 : vector<8x64xf32>
    %cst_102 = arith.constant 2.000000e+00 : f32
    %313 = vector.broadcast %cst_102 : f32 to vector<8x64xf32>
    %314 = arith.mulf %313, %312 : vector<8x64xf32>
    %315 = vector.extract_strided_slice %314 {offsets = [0, 4], sizes = [8, 60], strides = [1, 1]} : vector<8x64xf32> to vector<8x60xf32>
    %316 = vector.extract_strided_slice %314 {offsets = [0, 0], sizes = [8, 4], strides = [1, 1]} : vector<8x64xf32> to vector<8x4xf32>
    %317 = tpu.concatenate %315, %316 in 1 : vector<8x60xf32>, vector<8x4xf32> -> vector<8x64xf32>
    %318 = vector.extract_strided_slice %314 {offsets = [0, 60], sizes = [8, 4], strides = [1, 1]} : vector<8x64xf32> to vector<8x4xf32>
    %319 = vector.extract_strided_slice %314 {offsets = [0, 0], sizes = [8, 60], strides = [1, 1]} : vector<8x64xf32> to vector<8x60xf32>
    %320 = tpu.concatenate %318, %319 in 1 : vector<8x4xf32>, vector<8x60xf32> -> vector<8x64xf32>
    %cst_103 = arith.constant 1.000000e+00 : f32
    %321 = vector.broadcast %cst_103 : f32 to vector<8x64xf32>
    %322 = arith.addf %317, %321 : vector<8x64xf32>
    %323 = arith.cmpf ogt, %314, %322 : vector<8x64xf32>
    %c15_i32 = arith.constant 15 : i32
    %324 = vector.broadcast %c15_i32 : i32 to vector<8x64xi32>
    %325 = arith.cmpi slt, %268, %324 : vector<8x64xi32>
    %326 = arith.andi %323, %325 : vector<8x64xi1>
    %cst_104 = arith.constant 1.000000e+00 : f32
    %327 = vector.broadcast %cst_104 : f32 to vector<8x64xf32>
    %328 = arith.addf %314, %327 : vector<8x64xf32>
    %329 = arith.cmpf ogt, %320, %328 : vector<8x64xf32>
    %c0_i32 = arith.constant 0 : i32
    %330 = vector.broadcast %c0_i32 : i32 to vector<8x64xi32>
    %331 = arith.cmpi sgt, %268, %330 : vector<8x64xi32>
    %332 = arith.andi %329, %331 : vector<8x64xi1>
    %333 = vector.extract_strided_slice %99 {offsets = [0, 4], sizes = [8, 60], strides = [1, 1]} : vector<8x64xi32> to vector<8x60xi32>
    %334 = vector.extract_strided_slice %99 {offsets = [0, 0], sizes = [8, 4], strides = [1, 1]} : vector<8x64xi32> to vector<8x4xi32>
    %335 = tpu.concatenate %333, %334 in 1 : vector<8x60xi32>, vector<8x4xi32> -> vector<8x64xi32>
    %336 = vector.extract_strided_slice %99 {offsets = [0, 60], sizes = [8, 4], strides = [1, 1]} : vector<8x64xi32> to vector<8x4xi32>
    %337 = vector.extract_strided_slice %99 {offsets = [0, 0], sizes = [8, 60], strides = [1, 1]} : vector<8x64xi32> to vector<8x60xi32>
    %338 = tpu.concatenate %336, %337 in 1 : vector<8x4xi32>, vector<8x60xi32> -> vector<8x64xi32>
    %339 = arith.select %332, %338, %99 : vector<8x64xi1>, vector<8x64xi32>
    %340 = arith.select %326, %335, %339 : vector<8x64xi1>, vector<8x64xi32>
    %c0_105 = arith.constant 0 : index
    %c0_106 = arith.constant 0 : index
    %341 = vector.load %arg7[%c0_105, %c0_106] : memref<8x64xi32, #tpu.memory_space<vmem>>, vector<8x64xi32>
    tpu.vector_store %arg7[%c0_105, %c0_106], %340 {strides = array<i32>} : memref<8x64xi32, #tpu.memory_space<vmem>>, vector<8x64xi32>,
    %c0_107 = arith.constant 0 : index
    %c0_108 = arith.constant 0 : index
    %342 = vector.load %arg4[%c0_107, %c0_108] : memref<1x80xi32, #tpu.memory_space<vmem>>, vector<1x80xi32>
    %343 = vector.shape_cast %342 : vector<1x80xi32> to vector<1x80xi32>
    %344 = vector.broadcast %343 : vector<1x80xi32> to vector<8x80xi32>
    %c16_i32_109 = arith.constant 16 : i32
    %345 = vector.broadcast %c16_i32_109 : i32 to vector<8x80xi32>
    %346 = arith.muli %12, %345 : vector<8x80xi32>
    %347 = vector.broadcast %342 : vector<1x80xi32> to vector<8x80xi32>
    %348 = arith.addi %346, %347 : vector<8x80xi32>
    %c-1640531535_i32_110 = arith.constant -1640531535 : i32
    %349 = vector.broadcast %c-1640531535_i32_110 : i32 to vector<8x80xi32>
    %350 = arith.muli %348, %349 : vector<8x80xi32>
    %c625341585_i32_111 = arith.constant 625341585 : i32
    %351 = arith.addi %0, %c625341585_i32_111 : i32
    %352 = vector.broadcast %351 : i32 to vector<8x80xi32>
    %353 = arith.xori %350, %352 : vector<8x80xi32>
    %c16_i32_112 = arith.constant 16 : i32
    %354 = vector.broadcast %c16_i32_112 : i32 to vector<8x80xi32>
    %355 = arith.shrui %353, %354 : vector<8x80xi32>
    %356 = arith.xori %353, %355 : vector<8x80xi32>
    %c-2048144789_i32_113 = arith.constant -2048144789 : i32
    %357 = vector.broadcast %c-2048144789_i32_113 : i32 to vector<8x80xi32>
    %358 = arith.muli %356, %357 : vector<8x80xi32>
    %c13_i32_114 = arith.constant 13 : i32
    %359 = vector.broadcast %c13_i32_114 : i32 to vector<8x80xi32>
    %360 = arith.shrui %358, %359 : vector<8x80xi32>
    %361 = arith.xori %358, %360 : vector<8x80xi32>
    %c-1028477387_i32_115 = arith.constant -1028477387 : i32
    %362 = vector.broadcast %c-1028477387_i32_115 : i32 to vector<8x80xi32>
    %363 = arith.muli %361, %362 : vector<8x80xi32>
    %c16_i32_116 = arith.constant 16 : i32
    %364 = vector.broadcast %c16_i32_116 : i32 to vector<8x80xi32>
    %365 = arith.shrui %363, %364 : vector<8x80xi32>
    %366 = arith.xori %363, %365 : vector<8x80xi32>
    %c156059081_i32_117 = arith.constant 156059081 : i32
    %367 = vector.broadcast %c156059081_i32_117 : i32 to vector<8x80xi32>
    %368 = arith.addi %366, %367 : vector<8x80xi32>
    %c16_i32_118 = arith.constant 16 : i32
    %369 = vector.broadcast %c16_i32_118 : i32 to vector<8x80xi32>
    %370 = arith.shrui %368, %369 : vector<8x80xi32>
    %371 = arith.xori %368, %370 : vector<8x80xi32>
    %c-2048144789_i32_119 = arith.constant -2048144789 : i32
    %372 = vector.broadcast %c-2048144789_i32_119 : i32 to vector<8x80xi32>
    %373 = arith.muli %371, %372 : vector<8x80xi32>
    %c13_i32_120 = arith.constant 13 : i32
    %374 = vector.broadcast %c13_i32_120 : i32 to vector<8x80xi32>
    %375 = arith.shrui %373, %374 : vector<8x80xi32>
    %376 = arith.xori %373, %375 : vector<8x80xi32>
    %c-1028477387_i32_121 = arith.constant -1028477387 : i32
    %377 = vector.broadcast %c-1028477387_i32_121 : i32 to vector<8x80xi32>
    %378 = arith.muli %376, %377 : vector<8x80xi32>
    %c16_i32_122 = arith.constant 16 : i32
    %379 = vector.broadcast %c16_i32_122 : i32 to vector<8x80xi32>
    %380 = arith.shrui %378, %379 : vector<8x80xi32>
    %381 = arith.xori %378, %380 : vector<8x80xi32>
    %c8_i32_123 = arith.constant 8 : i32
    %382 = vector.broadcast %c8_i32_123 : i32 to vector<8x80xi32>
    %383 = arith.shrui %381, %382 : vector<8x80xi32>
    %384 = arith.sitofp %383 : vector<8x80xi32> to vector<8x80xf32>
    %cst_124 = arith.constant 5.000000e-01 : f32
    %385 = vector.broadcast %cst_124 : f32 to vector<8x80xf32>
    %386 = arith.addf %384, %385 : vector<8x80xf32>
    %cst_125 = arith.constant 5.96046448E-8 : f32
    %387 = vector.broadcast %cst_125 : f32 to vector<8x80xf32>
    %388 = arith.mulf %386, %387 : vector<8x80xf32>
    %cst_126 = arith.constant 2.000000e+00 : f32
    %389 = vector.broadcast %cst_126 : f32 to vector<8x80xf32>
    %390 = arith.mulf %389, %388 : vector<8x80xf32>
    %391 = vector.extract_strided_slice %390 {offsets = [0, 5], sizes = [8, 75], strides = [1, 1]} : vector<8x80xf32> to vector<8x75xf32>
    %392 = vector.extract_strided_slice %390 {offsets = [0, 0], sizes = [8, 5], strides = [1, 1]} : vector<8x80xf32> to vector<8x5xf32>
    %393 = tpu.concatenate %391, %392 in 1 : vector<8x75xf32>, vector<8x5xf32> -> vector<8x80xf32>
    %394 = vector.extract_strided_slice %390 {offsets = [0, 75], sizes = [8, 5], strides = [1, 1]} : vector<8x80xf32> to vector<8x5xf32>
    %395 = vector.extract_strided_slice %390 {offsets = [0, 0], sizes = [8, 75], strides = [1, 1]} : vector<8x80xf32> to vector<8x75xf32>
    %396 = tpu.concatenate %394, %395 in 1 : vector<8x5xf32>, vector<8x75xf32> -> vector<8x80xf32>
    %cst_127 = arith.constant 1.000000e+00 : f32
    %397 = vector.broadcast %cst_127 : f32 to vector<8x80xf32>
    %398 = arith.addf %393, %397 : vector<8x80xf32>
    %399 = arith.cmpf ogt, %390, %398 : vector<8x80xf32>
    %c15_i32_128 = arith.constant 15 : i32
    %400 = vector.broadcast %c15_i32_128 : i32 to vector<8x80xi32>
    %401 = arith.cmpi slt, %344, %400 : vector<8x80xi32>
    %402 = arith.andi %399, %401 : vector<8x80xi1>
    %cst_129 = arith.constant 1.000000e+00 : f32
    %403 = vector.broadcast %cst_129 : f32 to vector<8x80xf32>
    %404 = arith.addf %390, %403 : vector<8x80xf32>
    %405 = arith.cmpf ogt, %396, %404 : vector<8x80xf32>
    %c0_i32_130 = arith.constant 0 : i32
    %406 = vector.broadcast %c0_i32_130 : i32 to vector<8x80xi32>
    %407 = arith.cmpi sgt, %344, %406 : vector<8x80xi32>
    %408 = arith.andi %405, %407 : vector<8x80xi1>
    %409 = vector.extract_strided_slice %265 {offsets = [0, 5], sizes = [8, 75], strides = [1, 1]} : vector<8x80xf32> to vector<8x75xf32>
    %410 = vector.extract_strided_slice %265 {offsets = [0, 0], sizes = [8, 5], strides = [1, 1]} : vector<8x80xf32> to vector<8x5xf32>
    %411 = tpu.concatenate %409, %410 in 1 : vector<8x75xf32>, vector<8x5xf32> -> vector<8x80xf32>
    %412 = vector.extract_strided_slice %265 {offsets = [0, 75], sizes = [8, 5], strides = [1, 1]} : vector<8x80xf32> to vector<8x5xf32>
    %413 = vector.extract_strided_slice %265 {offsets = [0, 0], sizes = [8, 75], strides = [1, 1]} : vector<8x80xf32> to vector<8x75xf32>
    %414 = tpu.concatenate %412, %413 in 1 : vector<8x5xf32>, vector<8x75xf32> -> vector<8x80xf32>
    %415 = arith.select %408, %414, %265 : vector<8x80xi1>, vector<8x80xf32>
    %416 = arith.select %402, %411, %415 : vector<8x80xi1>, vector<8x80xf32>
    %c0_131 = arith.constant 0 : index
    %c0_132 = arith.constant 0 : index
    %417 = vector.load %arg8[%c0_131, %c0_132] : memref<8x80xf32, #tpu.memory_space<vmem>>, vector<8x80xf32>
    tpu.vector_store %arg8[%c0_131, %c0_132], %416 {strides = array<i32>} : memref<8x80xf32, #tpu.memory_space<vmem>>, vector<8x80xf32>,
    return
  }
  func.func @transform_0(%arg0: i32, %arg1: memref<1xi32, #tpu.memory_space<smem>>) -> (i32, i32) {
    %c0_i32 = arith.constant 0 : i32
    %c0_i32_0 = arith.constant 0 : i32
    %c0_i32_1 = arith.constant 0 : i32
    return %c0_i32, %c0_i32_0 : i32, i32
  }
  func.func @transform_1(%arg0: i32, %arg1: memref<1xi32, #tpu.memory_space<smem>>) -> (i32, i32) {
    %c0_i32 = arith.constant 0 : i32
    %c0_i32_0 = arith.constant 0 : i32
    %c0_i32_1 = arith.constant 0 : i32
    return %c0_i32, %c0_i32_0 : i32, i32
  }
  func.func @transform_2(%arg0: i32, %arg1: memref<1xi32, #tpu.memory_space<smem>>) -> (i32, i32) {
    %c0_i32 = arith.constant 0 : i32
    %c0_i32_0 = arith.constant 0 : i32
    %c0_i32_1 = arith.constant 0 : i32
    return %c0_i32, %c0_i32_0 : i32, i32
  }
  func.func @transform_3(%arg0: i32, %arg1: memref<1xi32, #tpu.memory_space<smem>>) -> (i32, i32) {
    %c0_i32 = arith.constant 0 : i32
    %c0_i32_0 = arith.constant 0 : i32
    return %arg0, %c0_i32 : i32, i32
  }
  func.func @transform_4(%arg0: i32, %arg1: memref<1xi32, #tpu.memory_space<smem>>) -> (i32, i32) {
    %c0_i32 = arith.constant 0 : i32
    %c0_i32_0 = arith.constant 0 : i32
    return %arg0, %c0_i32 : i32, i32
  }
  func.func @transform_5(%arg0: i32, %arg1: memref<1xi32, #tpu.memory_space<smem>>) -> (i32, i32) {
    %c0_i32 = arith.constant 0 : i32
    %c0_i32_0 = arith.constant 0 : i32
    return %arg0, %c0_i32 : i32, i32
  }
  func.func @transform_6(%arg0: i32, %arg1: memref<1xi32, #tpu.memory_space<smem>>) -> (i32, i32) {
    %c0_i32 = arith.constant 0 : i32
    %c0_i32_0 = arith.constant 0 : i32
    return %arg0, %c0_i32 : i32, i32
  }
}

</mosaic_0001>

<bundles_post_ra>
// kernel: tile.6
= control target key start
LH: loop header
LB: loop body
LE: loop exit
PB: predicated region body
PF: predicated region fallthrough
CT: control target
= control target key end

     0   :  { %s28_s0 = inlined_call_operand.vmem [shape: f32[4], index: 0, kind: input, shape index: {}]   ;;  %s29_s1 = inlined_call_operand.vmem [shape: f32[16,4], index: 1, kind: output, shape index: {}]  }
   0x1   :  { %v4_v0 = vld [vmem:[%s28_s0] ss:$0 sm:$0xff] }
   0x2   :  { %5 = vst [vmem:[%s29_s1] sm:$0xff] %v4_v0  ;;  %8 = vst [vmem:[%s29_s1 + $0x8] sm:$0xff] %v4_v0 }

// kernel: tile.7
= control target key start
LH: loop header
LB: loop body
LE: loop exit
PB: predicated region body
PF: predicated region fallthrough
CT: control target
= control target key end

     0   :  { %s131_s10 = smov 60   ;;  %s132_s11 = smov 52   ;;  %vm3_vm0 = vcmask 31744   ;;  %vm9_vm1 = vcmask 523744   ;;  %vm15_vm2 = vcmask 490944   ;;  %vm21_vm3 = vcmask 458144   ;;  %s207_s0 = inlined_call_operand.vmem [shape: f32[16,4], index: 0, kind: input, shape index: {}]   ;;  %s208_s1 = inlined_call_operand.vmem [shape: f32[1,64], index: 1, kind: output, shape index: {}]  }
   0x1   :  { %v101_v0 = vld [vmem:[%s207_s0 + $0xf] sm:$0x1]   ;;  %v103_v1 = vld [vmem:[%s207_s0 + $0xd] sm:$0x1]   ;;  %v102_v2 = vld [vmem:[%s207_s0 + $0xe] sm:$0x1]  }
   0x2   :  { %7 = vrot.lane.b32.xlu0 %v101_v0, %s131_s10  ;;  %19 = vrot.lane.b32.xlu1 %v103_v1, %s132_s11  ;;  %v104_v3 = vld [vmem:[%s207_s0 + $0xc] sm:$0x1]   ;;  %s133_s16 = smov 56   ;;  %s134_s17 = smov 48   ;;  %v105_v4 = vld [vmem:[%s207_s0 + $0xb] sm:$0x1]  }
   0x3   :  { %v106_v5 = vld [vmem:[%s207_s0 + $0xa] sm:$0x1]   ;;  %v2_v6 = vld [vmem:[%s207_s0] sm:$0x1]   ;;  %s135_s24 = smov 44   ;;  %s136_s25 = smov 40  }
   0x4   :  { %4 = vst.msk [vmem:[#allocation0] sm:$0x1] %vm3_vm0, %v2_v6   ;;  %v107_v7 = vld [vmem:[%s207_s0 + $0x9] sm:$0x1]   ;;  %v108_v8 = vld [vmem:[%s207_s0 + $0x8] sm:$0x1]  }
   0x5   :  { %s137_s30 = smov 36   ;;  %s138_s2 = smov 32   ;;  %v109_v9 = vld [vmem:[%s207_s0 + $0x7] sm:$0x1]   ;;  %v110_v10 = vld [vmem:[%s207_s0 + $0x6] sm:$0x1]  }
   0x6   :  { %13 = vrot.lane.b32.xlu0 %v102_v2, %s133_s16  ;;  %25 = vrot.lane.b32.xlu1 %v104_v3, %s134_s17  ;;  %s139_s7 = smov 28   ;;  %s140_s8 = smov 24   ;;  %v111_v11 = vld [vmem:[%s207_s0 + $0x5] sm:$0x1]   ;;  %v112_v12 = vld [vmem:[%s207_s0 + $0x4] sm:$0x1]  }
   0x7   :  { %s141_s13 = smov 20   ;;  %s142_s14 = smov 16   ;;  %v113_v13 = vld [vmem:[%s207_s0 + $0x3] sm:$0x1]   ;;  %v114_v14 = vld [vmem:[%s207_s0 + $0x2] sm:$0x1]  }
   0x8   :  { %s143_s19 = smov 12   ;;  %s144_s20 = smov 8   ;;  %v115_v15 = vld [vmem:[%s207_s0 + $0x1] sm:$0x1]   ;;  %vm27_vm4 = vcmask 425344   ;;  %vm33_vm5 = vcmask 392544  }
   0x9   :  { %s145_s0 = smov 4   ;;  %vm39_vm6 = vcmask 359744   ;;  %vm45_vm7 = vcmask 326944   ;;  %vm51_vm8 = vcmask 294144   ;;  %vm57_vm9 = vcmask 261344  }
   0xa   :  { %31 = vrot.lane.b32.xlu0 %v105_v4, %s135_s24  ;;  %37 = vrot.lane.b32.xlu1 %v106_v5, %s136_s25  ;;  %vm63_vm10 = vcmask 228544   ;;  %vm69_vm11 = vcmask 195744   ;;  %vm75_vm12 = vcmask 162944   ;;  %vm81_vm13 = vcmask 130144  }
   0xb   :  { %vm87_vm14 = vcmask 97344   ;;  %vm93_vm15 = vcmask 64544  }
   0xe   :  { %43 = vrot.lane.b32.xlu0 %v107_v7, %s137_s30  ;;  %49 = vrot.lane.b32.xlu1 %v108_v8, %s138_s2 }
  0x12   :  { %55 = vrot.lane.b32.xlu0 %v109_v9, %s139_s7  ;;  %61 = vrot.lane.b32.xlu1 %v110_v10, %s140_s8 }
  0x16   :  { %67 = vrot.lane.b32.xlu0 %v111_v11, %s141_s13  ;;  %73 = vrot.lane.b32.xlu1 %v112_v12, %s142_s14 }
  0x1a   :  { %79 = vrot.lane.b32.xlu0 %v113_v13, %s143_s19  ;;  %85 = vrot.lane.b32.xlu1 %v114_v14, %s144_s20 }
  0x1e   :  { %91 = vrot.lane.b32.xlu0 %v115_v15, %s145_s0 }
  0x74   :  { %v8_v16 = vpop.permute.xlu0 %7   ;;  %v20_v17 = vpop.permute.xlu1 %19  }
  0x75   :  { %10 = vst.msk [vmem:[#allocation0] sm:$0x1] %vm9_vm1, %v8_v16  }
  0x78   :  { %v14_v18 = vpop.permute.xlu0 %13   ;;  %v26_v19 = vpop.permute.xlu1 %25  }
  0x79   :  { %16 = vst.msk [vmem:[#allocation0] sm:$0x1] %vm15_vm2, %v14_v18  }
  0x7a   :  { %22 = vst.msk [vmem:[#allocation0] sm:$0x1] %vm21_vm3, %v20_v17  }
  0x7b   :  { %28 = vst.msk [vmem:[#allocation0] sm:$0x1] %vm27_vm4, %v26_v19  }
  0x7c   :  { %v32_v20 = vpop.permute.xlu0 %31   ;;  %v38_v21 = vpop.permute.xlu1 %37  }
  0x7d   :  { %34 = vst.msk [vmem:[#allocation0] sm:$0x1] %vm33_vm5, %v32_v20  }
  0x7e   :  { %40 = vst.msk [vmem:[#allocation0] sm:$0x1] %vm39_vm6, %v38_v21  }
  0x80   :  { %v44_v22 = vpop.permute.xlu0 %43   ;;  %v50_v23 = vpop.permute.xlu1 %49  }
  0x81   :  { %46 = vst.msk [vmem:[#allocation0] sm:$0x1] %vm45_vm7, %v44_v22  }
  0x82   :  { %52 = vst.msk [vmem:[#allocation0] sm:$0x1] %vm51_vm8, %v50_v23  }
  0x84   :  { %v56_v24 = vpop.permute.xlu0 %55   ;;  %v62_v25 = vpop.permute.xlu1 %61  }
  0x85   :  { %58 = vst.msk [vmem:[#allocation0] sm:$0x1] %vm57_vm9, %v56_v24  }
  0x86   :  { %64 = vst.msk [vmem:[#allocation0] sm:$0x1] %vm63_vm10, %v62_v25  }
  0x88   :  { %v68_v26 = vpop.permute.xlu0 %67   ;;  %v74_v27 = vpop.permute.xlu1 %73  }
  0x89   :  { %70 = vst.msk [vmem:[#allocation0] sm:$0x1] %vm69_vm11, %v68_v26  }
  0x8a   :  { %76 = vst.msk [vmem:[#allocation0] sm:$0x1] %vm75_vm12, %v74_v27  }
  0x8c   :  { %v80_v28 = vpop.permute.xlu0 %79   ;;  %v86_v29 = vpop.permute.xlu1 %85  }
  0x8d   :  { %82 = vst.msk [vmem:[#allocation0] sm:$0x1] %vm81_vm13, %v80_v28  }
  0x8e   :  { %88 = vst.msk [vmem:[#allocation0] sm:$0x1] %vm87_vm14, %v86_v29  }
  0x90   :  { %v92_v30 = vpop.permute.xlu0 %91  }
  0x91   :  { %94 = vst.msk [vmem:[#allocation0] sm:$0x1] %vm93_vm15, %v92_v30  }
  0x98   :  { %v98_v31 = vld [vmem:[#allocation0] sm:$0x1] }
  0x99   :  { %100 = vst [vmem:[%s208_s1] sm:$0x1] %v98_v31 }

// kernel: noise_forward.1
= control target key start
LH: loop header
LB: loop body
LE: loop exit
PB: predicated region body
PF: predicated region fallthrough
CT: control target
= control target key end

     0   :  { %s804_s26 = smov 0   ;;  %s933_s0 = inlined_call_operand.<no memory space> [shape: s32[1], index: 0, kind: input, shape index: {}]   ;;  %s934_s1 = inlined_call_operand.vmem [shape: f32[1,64], index: 1, kind: input, shape index: {}]   ;;  %s935_s2 = inlined_call_operand.vmem [shape: s32[1,64], index: 2, kind: input, shape index: {}]   ;;  %s936_s3 = inlined_call_operand.vmem [shape: s32[1,80], index: 3, kind: input, shape index: {}]   ;;  %s937_s4 = inlined_call_operand.vmem [shape: s32[16,64], index: 4, kind: input, shape index: {}]   ;;  %s938_s5 = inlined_call_operand.vmem [shape: f32[16,80], index: 5, kind: input, shape index: {}]   ;;  %s939_s6 = inlined_call_operand.vmem [shape: s32[16,64], index: 6, kind: output, shape index: {0}]   ;;  %s940_s7 = inlined_call_operand.vmem [shape: f32[16,80], index: 7, kind: output, shape index: {1}]  }
   0x1   :  { %13 = sst [smem:[#allocation3]] %s933_s0 }
   0x2 LB: > { %s810_s27 = sadd.s32 4294967295, %s751_s26   ;;  %p707_p0 = scmp.ge.s32.totalorder %s751_s26, 1  ;;  %s751_s26 = sphi %s804_s26, %s19_s26  }
   0x3   : > { %p225_p1 = scmp.lt.s32.totalorder %s751_s26, 3 }
   0x5   : > { %p226_p2 = pnand %p707_p0, %p225_p1 }
   0x6   : > { %s277_s28 = sld [smem:[#allocation3]] (!%p226_p2)  ;;  %v278_v0 = vlaneseq (!%p226_p2)  ;;  %s712_s0 = sshll.u32 (!%p226_p2), %s810_s27, 3  ;;  %v818_v4 = vld [vmem:[%s936_s3] ss:$0 sm:$0xff] (!%p226_p2)  ;;  %vm570_vm8 = vcmask (!%p226_p2), 613376   ;;  %vm501_vm10 = vcmask (!%p226_p2), 490496  }
   0x7   : > { %229 = sbr.rel (%p226_p2) target bundleno = 256 (0x100), region = 40  ;;  %v281_v1 = vstv (!%p226_p2), %s712_s0  ;;  %v823_v5 = vld [vmem:[%s935_s2] ss:$0 sm:$0xff] (!%p226_p2)  ;;  %p261_p3 = scmp.lt.s32.totalorder (!%p226_p2), %s810_s27, 1  ;;  %vm582_vm9 = vcmp.lt.s32.totalorder (!%p226_p2), %v818_v4, 15  ;;  %vm509_vm11 = vcmask (!%p226_p2), 31744  }
   0x8   : > { %v279_v2 = vshrl.u32 (!%p226_p2), %v278_v0, 7  ;;  %v284_v6 = vand.u32 (!%p226_p2), 127, %v278_v0  ;;  %s753_s17 = smov (!%p226_p2), 123   ;;  %s754_s18 = smov (!%p226_p2), 124   ;;  %vm517_vm14 = vcmp.gt.s32.totalorder (!%p226_p2), %v823_v5, 0 }
   0x9   : > { %s755_s19 = smov (!%p226_p2), 75   ;;  %s756_s20 = smov (!%p226_p2), 60  }
   0xa   : > { %v282_v3 = vadd.s32 (!%p226_p2), %v281_v1, %v279_v2  ;;  %s757_s25 = smov (!%p226_p2), 4   ;;  %s760_s0 = smov (!%p226_p2), 53  }
   0xc   : > { %v466_v7 = vmul.u32 (!%p226_p2), 16, %v282_v3  ;;  %s469_s10 = sadd.s32 (!%p226_p2), 625341585, %s277_s28  ;;  %v285_v8 = vmul.u32 (!%p226_p2), 64, %v282_v3  ;;  %s291_s11 = sadd.s32 (!%p226_p2), 1013904242, %s277_s28 }
   0xd   : > { %v287_v9 = vmul.u32 (!%p226_p2), 80, %v282_v3  ;;  %s313_s12 = sadd.s32 (!%p226_p2), 3039394381, %s277_s28  ;;  %s371_s13 = sadd.s32 (!%p226_p2), 458671337, %s277_s28  ;;  %v470_v13 = vstv (!%p226_p2), %s469_s10  ;;  %v292_v15 = vstv (!%p226_p2), %s291_s11 }
   0xe   : > { %v538_v10 = vadd.s32 %v818_v4, %v466_v7  ;;  %v467_v11 = vadd.s32 %v823_v5, %v466_v7  ;;  %v286_v12 = vadd.s32 %v285_v8, %v284_v6  ;;  %v314_v16 = vstv %s313_s12  ;;  %s349_s14 = sadd.s32 1759714724, %s277_s28  ;;  %s944_s27 = smov (!%p261_p3, %s810_s27), 1 }
   0xf   : > { %v288_v14 = vadd.s32 %v287_v9, %v284_v6  ;;  %v372_v19 = vstv %s371_s13  ;;  %v350_v20 = vstv %s349_s14  ;;  %s855_s21 = sshll.u32 %s944_s27, 3  ;;  %s758_s28 = smov 68  }
  0x10   : > { %v539_v17 = vmul.u32 2654435761, %v538_v10  ;;  %v468_v18 = vmul.u32 2654435761, %v467_v11  ;;  %s264_s24 = scalar_lea.vmem %s937_s4, %s855_s21  ;;  %s759_s27 = smov 5  }
  0x11   : > { %v290_v21 = vmul.u32 2654435761, %v286_v12  ;;  %v348_v22 = vmul.u32 2654435761, %v288_v14  ;;  %s268_s8 = scalar_lea.vmem %s938_s5, %s855_s21  ;;  %s272_s11 = scalar_lea.vmem %s939_s6, %s855_s21 }
  0x12   : > { %v540_v23 = vxor.u32 %v539_v17, %v470_v13  ;;  %v471_v24 = vxor.u32 %v470_v13, %v468_v18  ;;  %s276_s14 = scalar_lea.vmem %s940_s7, %s855_s21 }
  0x13   : > { %v293_v25 = vxor.u32 %v292_v15, %v290_v21  ;;  %v315_v26 = vxor.u32 %v314_v16, %v290_v21  ;;  %v373_v27 = vxor.u32 %v372_v19, %v348_v22  ;;  %v827_v28 = vxor.u32 %v350_v20, %v348_v22 }
  0x14   : > { %v541_v29 = vshrl.u32 %v540_v23, 16  ;;  %v472_v30 = vshrl.u32 %v471_v24, 16 }
  0x15   : > { %v294_v31 = vshrl.u32 %v293_v25, 16  ;;  %v316_v32 = vshrl.u32 %v315_v26, 16  ;;  %v374_v33 = vshrl.u32 %v373_v27, 16 }
  0x16   : > { %v542_v34 = vxor.u32 %v541_v29, %v540_v23  ;;  %v473_v35 = vxor.u32 %v472_v30, %v471_v24 }
  0x17   : > { %v295_v36 = vxor.u32 %v294_v31, %v293_v25  ;;  %v317_v37 = vxor.u32 %v316_v32, %v315_v26  ;;  %v375_v38 = vxor.u32 %v374_v33, %v373_v27 }
  0x18   : > { %v543_v39 = vmul.u32 2246822507, %v542_v34  ;;  %v474_v40 = vmul.u32 2246822507, %v473_v35 }
  0x19   : > { %v296_v41 = vmul.u32 2246822507, %v295_v36  ;;  %v318_v42 = vmul.u32 2246822507, %v317_v37 }
  0x1a   : > { %v544_v43 = vshrl.u32 %v543_v39, 13  ;;  %v475_v44 = vshrl.u32 %v474_v40, 13  ;;  %v376_v45 = vmul.u32 2246822507, %v375_v38 }
  0x1b   : > { %v297_v46 = vshrl.u32 %v296_v41, 13  ;;  %v319_v47 = vshrl.u32 %v318_v42, 13 }
  0x1c   : > { %v545_v48 = vxor.u32 %v544_v43, %v543_v39  ;;  %v476_v49 = vxor.u32 %v475_v44, %v474_v40  ;;  %v377_v50 = vshrl.u32 %v376_v45, 13 }
  0x1d   : > { %v298_v51 = vxor.u32 %v297_v46, %v296_v41  ;;  %v320_v52 = vxor.u32 %v319_v47, %v318_v42 }
  0x1e   : > { %v546_v53 = vmul.u32 3266489909, %v545_v48  ;;  %v477_v54 = vmul.u32 3266489909, %v476_v49  ;;  %v378_v55 = vxor.u32 %v377_v50, %v376_v45 }
  0x1f   : > { %v299_v56 = vmul.u32 3266489909, %v298_v51  ;;  %v321_v57 = vmul.u32 3266489909, %v320_v52 }
  0x20   : > { %v547_v58 = vshrl.u32 %v546_v53, 16  ;;  %v478_v59 = vshrl.u32 %v477_v54, 16  ;;  %v379_v60 = vmul.u32 3266489909, %v378_v55  ;;  %v352_v55 = vshrl.u32 %v827_v28, 16 }
  0x21   : > { %v300_v61 = vshrl.u32 %v299_v56, 16  ;;  %v322_v62 = vshrl.u32 %v321_v57, 16 }
  0x22   : > { %v548_v63 = vxor.u32 %v547_v58, %v546_v53  ;;  %v479_v0 = vxor.u32 %v478_v59, %v477_v54  ;;  %v380_v1 = vshrl.u32 %v379_v60, 16 }
  0x23   : > { %v301_v2 = vxor.u32 %v300_v61, %v299_v56  ;;  %v323_v3 = vxor.u32 %v322_v62, %v321_v57 }
  0x24   : > { %v549_v6 = vadd.s32 156059081, %v548_v63  ;;  %v480_v7 = vadd.s32 156059081, %v479_v0  ;;  %v381_v8 = vxor.u32 %v380_v1, %v379_v60  ;;  %v353_v1 = vxor.u32 %v352_v55, %v827_v28 }
  0x25   : > { %v302_v9 = vadd.s32 3334262626, %v301_v2  ;;  %v324_v10 = vadd.s32 1381156517, %v323_v3 }
  0x26   : > { %v550_v11 = vshrl.u32 %v549_v6, 16  ;;  %v481_v12 = vshrl.u32 %v480_v7, 16  ;;  %v382_v13 = vadd.s32 3772083553, %v381_v8  ;;  %v354_v28 = vmul.u32 2246822507, %v353_v1 }
  0x27   : > { %v303_v14 = vshrl.u32 %v302_v9, 16  ;;  %v325_v15 = vshrl.u32 %v324_v10, 16 }
  0x28   : > { %v551_v16 = vxor.u32 %v550_v11, %v549_v6  ;;  %v482_v17 = vxor.u32 %v481_v12, %v480_v7  ;;  %v383_v18 = vshrl.u32 %v382_v13, 16 }
  0x29   : > { %v326_v19 = vxor.u32 %v325_v15, %v324_v10  ;;  %v304_v22 = vxor.u32 %v303_v14, %v302_v9  ;;  %v713_v9 = vld [vmem:[%s934_s1] ss:$0 sm:$0xff] }
  0x2a   : > { %v552_v20 = vmul.u32 2246822507, %v551_v16  ;;  %v483_v21 = vmul.u32 2246822507, %v482_v17  ;;  %v384_v23 = vxor.u32 %v383_v18, %v382_v13  ;;  %v355_v16 = vshrl.u32 %v354_v28, 13 }
  0x2b   : > { %v327_v24 = vmul.u32 2246822507, %v326_v19  ;;  %v305_v32 = vmul.u32 2246822507, %v304_v22 }
  0x2c   : > { %v553_v25 = vshrl.u32 %v552_v20, 13  ;;  %v484_v26 = vshrl.u32 %v483_v21, 13  ;;  %v385_v27 = vmul.u32 2246822507, %v384_v23  ;;  %v289_v23 = vld [vmem:[%s264_s24] sm:$0xff] }
  0x2d   : > { %v328_v29 = vshrl.u32 %v327_v24, 13  ;;  %v306_v41 = vshrl.u32 %v305_v32, 13 }
  0x2e   : > { %v554_v30 = vxor.u32 %v553_v25, %v552_v20  ;;  %v485_v31 = vxor.u32 %v484_v26, %v483_v21  ;;  %v386_v33 = vshrl.u32 %v385_v27, 13  ;;  %v356_v20 = vxor.u32 %v355_v16, %v354_v28 }
  0x2f   : > { %v329_v34 = vxor.u32 %v328_v29, %v327_v24  ;;  %v307_v50 = vxor.u32 %v306_v41, %v305_v32 }
  0x30   : > { %v555_v35 = vmul.u32 3266489909, %v554_v30  ;;  %v486_v36 = vmul.u32 3266489909, %v485_v31  ;;  %v387_v37 = vxor.u32 %v386_v33, %v385_v27 }
  0x31   : > { %v330_v38 = vmul.u32 3266489909, %v329_v34  ;;  %v308_v60 = vmul.u32 3266489909, %v307_v50 }
  0x32   : > { %v556_v39 = vshrl.u32 %v555_v35, 16  ;;  %v487_v40 = vshrl.u32 %v486_v36, 16  ;;  %v388_v42 = vmul.u32 3266489909, %v387_v37  ;;  %v357_v24 = vmul.u32 3266489909, %v356_v20 }
  0x33   : > { %v331_v43 = vshrl.u32 %v330_v38, 16  ;;  %v309_v8 = vshrl.u32 %v308_v60, 16 }
  0x34   : > { %v557_v44 = vxor.u32 %v556_v39, %v555_v35  ;;  %v488_v45 = vxor.u32 %v487_v40, %v486_v36  ;;  %v389_v46 = vshrl.u32 %v388_v42, 16  ;;  %v358_v30 = vshrl.u32 %v357_v24, 16 }
  0x35   : > { %v332_v47 = vxor.u32 %v331_v43, %v330_v38  ;;  %v310_v14 = vxor.u32 %v309_v8, %v308_v60 }
  0x36   : > { %v558_v48 = vshrl.u32 %v557_v44, 8  ;;  %v489_v49 = vshrl.u32 %v488_v45, 8  ;;  %v390_v51 = vxor.u32 %v389_v46, %v388_v42  ;;  %v359_v34 = vxor.u32 %v358_v30, %v357_v24 }
  0x37   : > { %v333_v52 = vshrl.u32 %v332_v47, 8  ;;  %v311_v19 = vshrl.u32 %v310_v14, 8 }
  0x38   : > { %v559_v53 = vcvt.s32.f32 %v558_v48  ;;  %v490_v54 = vcvt.s32.f32 %v489_v49  ;;  %v391_v56 = vshrl.u32 %v390_v51, 8  ;;  %v360_v37 = vadd.s32 3143561092, %v359_v34 }
  0x39   : > { %v334_v57 = vcvt.s32.f32 %v333_v52  ;;  %vm312_vm0 = vcmp.ge.s32.totalorder %v311_v19, 1677721 }
  0x3a   : > { %v560_v58 = vadd.f32 0.5, %v559_v53  ;;  %v491_v59 = vadd.f32 0.5, %v490_v54  ;;  %v392_v61 = vcvt.s32.f32 %v391_v56  ;;  %v361_v40 = vshrl.u32 %v360_v37, 16 }
  0x3b   : > { %v335_v62 = vadd.f32 0.5, %v334_v57 }
  0x3c   : > { %v561_v63 = vmul.f32 5.9604645e-08, %v560_v58  ;;  %v492_v0 = vmul.f32 5.9604645e-08, %v491_v59  ;;  %v393_v2 = vadd.f32 0.5, %v392_v61  ;;  %v362_v46 = vxor.u32 %v361_v40, %v360_v37 }
  0x3d   : > { %v336_v3 = vmul.f32 5.9604645e-08, %v335_v62 }
  0x3e   : > { %v832_v6 = vmul.f32 2.0, %v561_v63  ;;  %v834_v7 = vmul.f32 2.0, %v492_v0  ;;  %v839_v10 = vmul.f32 5.9604645e-08, %v393_v2  ;;  %v363_v53 = vmul.u32 2246822507, %v362_v46 }
  0x3f   : > { %v344_v12 = vmul.f32 %v713_v9, %v336_v3 }
  0x40   : > { %564 = vrot.lane.b32.xlu1 %v832_v6, %s753_s17  ;;  %495 = vrot.lane.b32.xlu0 %v834_v7, %s754_s18  ;;  %v420_v11 = vsub.f32 1.0, %v839_v10  ;;  %v848_v13 = vadd.f32 -0.5, %v839_v10  ;;  %v364_v60 = vshrl.u32 %v363_v53, 13  ;;  %vm455_vm3 = vcmp.gt.f32.partialorder %v839_v10, 0.02425 }
  0x41   : > { %v719_v17 = vtrunc.f32 %v344_v12  ;;  %vm456_vm4 = vcmp.lt.f32.partialorder %v839_v10, 0.97575  ;;  %vm452_vm5 = vcmp.lt.f32.partialorder %v839_v10, 0.5  ;;  %v515_v46 = vadd.f32 1.0, %v834_v7 }
  0x42   : > { %v421_v15 = vmin.f32 %v839_v10, %v420_v11  ;;  %v859_v18 = vmul.f32 %v848_v13, %v848_v13  ;;  %v365_v3 = vxor.u32 %v364_v60, %v363_v53  ;;  %vm457_vm6 = vmand %vm455_vm3, %vm456_vm4  ;;  %vm531_vm4 = vcmask 523264  }
  0x43   : > { %v720_v21 = vcvt.f32.s32 %v719_v17 }
  0x44   : > { %567 = vrot.lane.b32.xlu1 %v832_v6, %s755_s19  ;;  %498 = vrot.lane.b32.xlu0 %v834_v7, %s756_s20  ;;  %737 = vlog2.f32 %v421_v15  ;;  %v408_v22 = vmul.f32 -54.476097, %v859_v18  ;;  %v397_v33 = vmul.f32 -39.69683, %v859_v18  ;;  %v366_v15 = vmul.u32 3266489909, %v365_v3 }
  0x45   : > { %v872_v25 = vsel %vm312_vm0, %v289_v23, %v720_v21  ;;  %vm513_vm0 = vcmp.lt.s32.totalorder %v823_v5, 15 }
  0x46   : > { %v409_v26 = vadd.f32 161.58583, %v408_v22  ;;  %v398_v36 = vadd.f32 220.9461, %v397_v33  ;;  %v367_v20 = vshrl.u32 %v366_v15, 16  ;;  %v347_v33 = vld [vmem:[%s268_s8] sm:$0xff] }
  0x48   : > { %506 = vrot.lane.b32.xlu1 %v834_v7, %s757_s25  ;;  %503 = vrot.lane.b32.xlu0 %v834_v7, %s758_s28  ;;  %v410_v31 = vmul.f32 %v409_v26, %v859_v18  ;;  %v399_v39 = vmul.f32 %v398_v36, %v859_v18  ;;  %v368_v23 = vxor.u32 %v367_v20, %v366_v15 }
  0x4a   : > { %v411_v35 = vadd.f32 -155.69897, %v410_v31  ;;  %v400_v44 = vadd.f32 -275.9285, %v399_v39  ;;  %v369_v30 = vshrl.u32 %v368_v23, 8 }
  0x4c   : > { %575 = vrot.lane.b32.xlu1 %v832_v6, %s759_s27  ;;  %572 = vrot.lane.b32.xlu0 %v832_v6, %s760_s0  ;;  %v412_v38 = vmul.f32 %v411_v35, %v859_v18  ;;  %v401_v50 = vmul.f32 %v400_v44, %v859_v18  ;;  %vm370_vm7 = vcmp.lt.s32.totalorder %v369_v30, 1677721 }
  0x4e   : > { %v738_v27 = vpop.eup %737  ;;  %v413_v42 = vadd.f32 66.801315, %v412_v38  ;;  %v402_v57 = vadd.f32 138.35776, %v401_v50 }
  0x4f   : > { %v423_v29 = vmul.f32 0.6931472, %v738_v27 }
  0x50   : > { %526 = vrot.lane.b32.xlu1 %v872_v25, %s757_s25  ;;  %524 = vrot.lane.b32.xlu0 %v872_v25, %s758_s28  ;;  %v414_v48 = vmul.f32 %v413_v42, %v859_v18  ;;  %v403_v0 = vmul.f32 %v402_v57, %v859_v18 }
  0x51   : > { %v424_v32 = vmul.f32 -2.0, %v423_v29 }
  0x52   : > { %v415_v56 = vadd.f32 -13.280682, %v414_v48  ;;  %v404_v11 = vadd.f32 -30.664799, %v403_v0 }
  0x53   : > { %739 = vrsqrt.f32 %v424_v32  ;;  %vm427_vm1 = vcmp.eq.f32.partialorder %v424_v32, inf  ;;  %v430_v43 = vand.u32 2147483648, %v424_v32  ;;  %vm429_vm2 = vcmp.eq.f32.partialorder %v424_v32, 0.0 }
  0x54   : > { %521 = vrot.lane.b32.xlu1 %v872_v25, %s756_s20  ;;  %519 = vrot.lane.b32.xlu0 %v872_v25, %s754_s18  ;;  %v416_v63 = vmul.f32 %v415_v56, %v859_v18  ;;  %v405_v19 = vmul.f32 %v404_v11, %v859_v18 }
  0x56   : > { %v417_v28 = vadd.f32 1.0, %v416_v63  ;;  %v406_v22 = vadd.f32 2.5066283, %v405_v19 }
  0x58   : > { %741 = vrcp.f32 %v417_v28  ;;  %v407_v26 = vmul.f32 %v848_v13, %v406_v22 }
  0x5d   : > { %v740_v41 = vpop.eup %739 }
  0x5e   : > { %v426_v45 = vmul.f32 %v740_v41, %v424_v32 }
  0x60   : > { %v428_v47 = vsel %vm427_vm1, %v424_v32, %v426_v45 }
  0x61   : > { %v431_v49 = vsel %vm429_vm2, %v430_v43, %v428_v47 }
  0x62   : > { %v432_v51 = vmul.f32 -0.007784894, %v431_v49  ;;  %v442_v52 = vmul.f32 0.007784696, %v431_v49  ;;  %v742_v27 = vpop.eup %741 }
  0x63   : > { %v419_v18 = vmul.f32 %v742_v27, %v407_v26 }
  0x64   : > { %v433_v54 = vadd.f32 -0.32239646, %v432_v51  ;;  %v443_v55 = vadd.f32 0.32246712, %v442_v52 }
  0x66   : > { %v434_v58 = vmul.f32 %v433_v54, %v431_v49  ;;  %v444_v59 = vmul.f32 %v443_v55, %v431_v49 }
  0x68   : > { %v435_v61 = vadd.f32 -2.4007583, %v434_v58  ;;  %v445_v62 = vadd.f32 2.4451342, %v444_v59 }
  0x6a   : > { %v436_v1 = vmul.f32 %v435_v61, %v431_v49  ;;  %v446_v2 = vmul.f32 %v445_v62, %v431_v49 }
  0x6c   : > { %v437_v8 = vadd.f32 -2.5497324, %v436_v1  ;;  %v447_v9 = vadd.f32 3.7544086, %v446_v2 }
  0x6e   : > { %v438_v12 = vmul.f32 %v437_v8, %v431_v49  ;;  %v448_v14 = vmul.f32 %v447_v9, %v431_v49 }
  0x70   : > { %v449_v16 = vadd.f32 1.0, %v448_v14  ;;  %v439_v17 = vadd.f32 4.3746643, %v438_v12 }
  0x72   : > { %743 = vrcp.f32 %v449_v16  ;;  %v440_v21 = vmul.f32 %v439_v17, %v431_v49 }
  0x74   : > { %v441_v24 = vadd.f32 2.938164, %v440_v21 }
  0x7c   : > { %v744_v29 = vpop.eup %743 }
  0x7d   : > { %v451_v31 = vmul.f32 %v744_v29, %v441_v24 }
  0x7f   : > { %v453_v32 = vsub.f32 0.0, %v451_v31 }
  0x81   : > { %v454_v13 = vsel %vm452_vm5, %v451_v31, %v453_v32  ;;  %vm578_vm5 = vcmask 39936  }
  0x82   : > { %v458_v34 = vsel %vm457_vm6, %v419_v18, %v454_v13  ;;  %vm586_vm6 = vcmp.gt.s32.totalorder %v818_v4, 0 }
  0x83   : > { %v459_v35 = vsel %vm370_vm7, %v458_v34, 0.0 }
  0x84   : > { %v460_v36 = vadd.f32 %v459_v35, %v347_v33 }
  0x86   : > { %599 = vrot.lane.b32.xlu1 %v460_v36, %s759_s27  ;;  %596 = vrot.lane.b32.xlu0 %v460_v36, %s760_s0 }
  0x8a   : > { %592 = vrot.lane.b32.xlu1 %v460_v36, %s755_s19  ;;  %589 = vrot.lane.b32.xlu0 %v460_v36, %s753_s17 }
  0xb2   : > { %v565_v37 = vpop.permute.xlu1 %564  ;;  %v496_v38 = vpop.permute.xlu0 %495 }
  0xb6   : > { %v568_v10 = vpop.permute.xlu1 %567  ;;  %v499_v39 = vpop.permute.xlu0 %498 }
  0xb7   : > { %v571_v40 = vsel %vm570_vm8, %v565_v37, %v568_v10  ;;  %v502_v45 = vsel %vm501_vm10, %v496_v38, %v499_v39 }
  0xb8   : > { %v580_v41 = vadd.f32 1.0, %v571_v40  ;;  %v511_v48 = vadd.f32 1.0, %v502_v45 }
  0xba   : > { %vm581_vm12 = vcmp.gt.f32.partialorder %v832_v6, %v580_v41  ;;  %v507_v42 = vpop.permute.xlu1 %506  ;;  %v504_v43 = vpop.permute.xlu0 %503  ;;  %vm512_vm1 = vcmp.gt.f32.partialorder %v834_v7, %v511_v48  ;;  %v584_v7 = vadd.f32 1.0, %v832_v6 }
  0xbb   : > { %vm904_vm13 = vmand %vm581_vm12, %vm582_vm9  ;;  %v510_v47 = vsel %vm509_vm11, %v504_v43, %v507_v42 }
  0xbc   : > { %vm516_vm15 = vcmp.gt.f32.partialorder %v510_v47, %v515_v46  ;;  %vm514_vm3 = vmand %vm512_vm1, %vm513_vm0 }
  0xbd   : > { %vm518_vm2 = vmand %vm516_vm15, %vm517_vm14 }
  0xbe   : > { %v576_v49 = vpop.permute.xlu1 %575  ;;  %v573_v50 = vpop.permute.xlu0 %572 }
  0xbf   : > { %v579_v58 = vsel %vm578_vm5, %v573_v50, %v576_v49 }
  0xc0   : > { %vm585_vm7 = vcmp.gt.f32.partialorder %v579_v58, %v584_v7 }
  0xc1   : > { %vm587_vm9 = vmand %vm585_vm7, %vm586_vm6 }
  0xc2   : > { %v527_v51 = vpop.permute.xlu1 %526  ;;  %v525_v52 = vpop.permute.xlu0 %524 }
  0xc3   : > { %v528_v53 = vsel %vm509_vm11, %v525_v52, %v527_v51  ;;  %vm605_vm11 = vcmask 654336  }
  0xc4   : > { %v529_v54 = vsel %vm518_vm2, %v528_v53, %v872_v25 }
  0xc6   : > { %v522_v55 = vpop.permute.xlu1 %521  ;;  %v520_v56 = vpop.permute.xlu0 %519 }
  0xc7   : > { %v523_v5 = vsel %vm501_vm10, %v520_v56, %v522_v55 }
  0xc8   : > { %v530_v57 = vsel %vm514_vm3, %v523_v5, %v529_v54 }
  0xc9   : > { %532 = vst.msk [vmem:[%s272_s11] sm:$0xff] %vm531_vm4, %v530_v57 }
  0xf8   : > { %v600_v59 = vpop.permute.xlu1 %599  ;;  %v597_v60 = vpop.permute.xlu0 %596 }
  0xf9   : > { %v602_v25 = vsel %vm578_vm5, %v597_v60, %v600_v59 }
  0xfa   : > { %v603_v63 = vsel %vm587_vm9, %v602_v25, %v460_v36 }
  0xfc   : > { %v593_v61 = vpop.permute.xlu1 %592  ;;  %v590_v62 = vpop.permute.xlu0 %589 }
  0xfd   : > { %v595_v0 = vsel %vm570_vm8, %v590_v62, %v593_v61 }
  0xfe   : > { %v604_v6 = vsel %vm904_vm13, %v595_v0, %v603_v63 }
  0xff   : > { %606 = vst.msk [vmem:[%s276_s14] sm:$0xff] %vm605_vm11, %v604_v6 }
 0x100 PF: > { %s19_s26 = sadd.s32 1, %s751_s26  }
 0x101   : > { %p16_p4 = scmp.ge.s32.totalorder %s19_s26, 4  }
 0x103   :  { %18 = sbr.rel (!%p16_p4) target bundleno = 2 (0x2), region = 85 }

</bundles_post_ra>
